<compile_context>
chip_gen: v7x
topology: tpu7x:2x2x1
jax: 0.10.0
libtpu: 0.0.40
codegen_flags: <defaults>
</compile_context>

<pallas_src>
import functools

import jax
import jax.numpy as jnp
from jax.experimental import pallas as pl
from jax.experimental.pallas import tpu as pltpu


# --------------------------------------------------------------------------
# Kernel: phase-folded 3x3 conv on the original-resolution input, plus
#         per-batch per-channel sum / sum-of-squares (for training-mode BN).
# --------------------------------------------------------------------------
def _up_conv_phase_kernel(x_ref, w_ref, y_ref, stats_ref, *, h, w):
    # x_ref     : (1, Cin, L)  row-padded input, spatial flattened, 1 guard
    #             element at each end of the flat axis.  L = (H+2)*W + 2.
    # w_ref     : (2, 2, Cout_t, 4*Cin)  folded per-phase weights.
    # y_ref     : (1, 2, 2, Cout_t, H*W) per-phase conv output (channel-major).
    # stats_ref : (1, 2, Cout_t, 1)      [sum, sum-of-squares] for this batch.
    hw = h * w

    # Column-validity masks for the +-1 column taps (the conv's zero padding):
    # a flat shift wraps row boundaries, so those lanes are masked to zero.
    col = jax.lax.broadcasted_iota(jnp.int32, (1, hw), 1) % w
    first_col = col == 0
    last_col = col == (w - 1)

    # The 9 distinct (row_offset, col_shift) tap views, each (Cin, H*W).
    # row_offset in {0,1,2} indexes the row-padded rows; col shift s in
    # {-1,0,+1} is a lane-dense offset slice of the flattened spatial axis.
    taps = {}
    for ro in range(3):
        for s in (-1, 0, 1):
            start = 1 + ro * w + s
            sl = x_ref[:, :, pl.ds(start, hw)][0]          # (Cin, H*W)
            if s == -1:
                sl = jnp.where(first_col, 0.0, sl)
            elif s == 1:
                sl = jnp.where(last_col, 0.0, sl)
            taps[(ro, s)] = sl

    wfold = w_ref[...]                                     # (2, 2, Cout_t, 4*Cin)

    sum_acc = None
    ssq_acc = None
    for py in range(2):
        for px in range(2):
            # K-deep patch (4*Cin, H*W); tap order (r, c) row-major matches the
            # weight fold layout built in the wrapper.
            patch = jnp.concatenate(
                [taps[(py + r, px + c - 1)] for r in range(2) for c in range(2)],
                axis=0)
            y = jnp.dot(wfold[py, px], patch,
                        preferred_element_type=jnp.float32)  # (Cout_t, H*W)
            y_ref[0, py, px] = y.astype(y_ref.dtype)

            ps = jnp.sum(y, axis=1, keepdims=True)            # (Cout_t, 1)
            pq = jnp.sum(y * y, axis=1, keepdims=True)
            sum_acc = ps if sum_acc is None else sum_acc + ps
            ssq_acc = pq if ssq_acc is None else ssq_acc + pq

    stats_ref[0, 0] = sum_acc
    stats_ref[0, 1] = ssq_acc


# --------------------------------------------------------------------------
# Wrapper
# --------------------------------------------------------------------------
@jax.jit
def up_conv_forward(x_nchw, w_oihw, bias, gamma, beta, eps=1e-5):
    """x_nchw: (N, Cin, H, W) -> (N, Cout, 2H, 2W), matching PyTorch up_conv."""
    # Conv bias cancels exactly under training-mode BatchNorm (mean absorbs it,
    # variance is shift-invariant), so it is dropped from the compute.
    del bias
    n, cin, h, w = x_nchw.shape
    cout = w_oihw.shape[0]
    dtype = x_nchw.dtype
    hw = h * w

    # ---- fold the 3x3 weights into 4 per-phase 2x2 stencils (K = 4*Cin) ----
    # fold[parity, tap, dy]: which conv rows (cols) collapse onto which of the
    # two original-resolution taps for output parity 0 / 1.
    fold = jnp.array([[[1., 0., 0.], [0., 1., 1.]],
                      [[1., 1., 0.], [0., 0., 1.]]], jnp.float32)
    wf = jnp.einsum('prd,qce,oide->pqorci', fold, fold,
                    w_oihw.astype(jnp.float32))           # (2,2,Cout,2,2,Cin)
    wf = wf.reshape(2, 2, cout, 4 * cin).astype(dtype)

    # ---- input prep: row-pad by 1, flatten spatial, 1 guard element/end ----
    # (~1.1x of the source input in HBM; the 2x-upsampled + zero-padded tensor
    #  is never materialized.)
    x_rows = jnp.pad(x_nchw, ((0, 0), (0, 0), (1, 1), (0, 0)))   # (N,Cin,H+2,W)
    x_flat = jnp.pad(x_rows.reshape(n, cin, (h + 2) * w),
                     ((0, 0), (0, 0), (1, 1)))                   # (N,Cin,L)
    l = (h + 2) * w + 2

    # Cout tiling for realistic channel counts (single tile at small Cout).
    if cout % 256 == 0:
        co_t = 256
    elif cout % 128 == 0:
        co_t = 128
    else:
        co_t = cout
    n_co = cout // co_t

    kernel = functools.partial(_up_conv_phase_kernel, h=h, w=w)
    y5, stats = pl.pallas_call(
        kernel,
        out_shape=(
            jax.ShapeDtypeStruct((n, 2, 2, cout, hw), dtype),
            jax.ShapeDtypeStruct((n, 2, cout, 1), jnp.float32),
        ),
        grid_spec=pltpu.PrefetchScalarGridSpec(
            num_scalar_prefetch=0,
            grid=(n, n_co),
            in_specs=[
                pl.BlockSpec((1, cin, l), lambda b, co: (b, 0, 0)),
                pl.BlockSpec((2, 2, co_t, 4 * cin), lambda b, co: (0, 0, co, 0)),
            ],
            out_specs=[
                pl.BlockSpec((1, 2, 2, co_t, hw), lambda b, co: (b, 0, 0, co, 0)),
                pl.BlockSpec((1, 2, co_t, 1), lambda b, co: (b, 0, co, 0)),
            ],
        ),
        compiler_params=pltpu.CompilerParams(
            # No cross-grid-step accumulation -> both axes fully parallel
            # (shards across v7x's two TensorCores).
            dimension_semantics=("parallel", "parallel"),
            vmem_limit_bytes=32 * 1024 * 1024,
        ),
    )(x_flat, wf)
    # TODO(synk): for very large H*W add a spatial grid axis with a 1-row halo
    # (manual DMA or Element-indexed blocks) so blocks fit v7x's 64 MiB VMEM.

    # ---- training-mode BN: fold batch statistics into per-channel affine ----
    count = jnp.float32(n * 4 * hw)                 # = N * (2H) * (2W)
    tot = jnp.sum(stats, axis=0)                    # (2, Cout, 1)
    mean = tot[0, :, 0] / count
    var = tot[1, :, 0] / count - mean * mean        # biased var (BN training fwd)
    inv_std = jax.lax.rsqrt(var + eps)
    scale = gamma.astype(jnp.float32) * inv_std
    shift = beta.astype(jnp.float32) - mean * scale

    # ---- epilogue: affine + ReLU + phase interleave.  The kernel output is
    # already channel-major, so XLA fuses this into a single pass that lands
    # directly in NCHW (no separate full-tensor transpose pass).
    y6 = y5.reshape(n, 2, 2, cout, h, w).astype(jnp.float32)
    out = jnp.maximum(y6 * scale[None, None, None, :, None, None]
                      + shift[None, None, None, :, None, None], 0.0)
    out = jnp.transpose(out, (0, 3, 4, 1, 5, 2)).reshape(n, cout, 2 * h, 2 * w)
    return out.astype(dtype)


# --------------------------------------------------------------------------
# Pure-JAX reference (for in-script verification; includes the conv bias)
# --------------------------------------------------------------------------
def up_conv_reference(x_nchw, w_oihw, bias, gamma, beta, eps=1e-5):
    xu = jnp.repeat(jnp.repeat(x_nchw, 2, axis=2), 2, axis=3)
    y = jax.lax.conv_general_dilated(
        xu.astype(jnp.float32), w_oihw.astype(jnp.float32),
        window_strides=(1, 1), padding=((1, 1), (1, 1)),
        dimension_numbers=("NCHW", "OIHW", "NCHW"))
    y = y + bias[None, :, None, None]
    mean = y.mean(axis=(0, 2, 3))
    var = y.var(axis=(0, 2, 3))
    yn = (y - mean[None, :, None, None]) * jax.lax.rsqrt(
        var[None, :, None, None] + eps)
    return jnp.maximum(yn * gamma[None, :, None, None]
                       + beta[None, :, None, None], 0.0)


if __name__ == "__main__":
    key = jax.random.PRNGKey(0)
    kx, kw, kb = jax.random.split(key, 3)

    N, CH_IN, CH_OUT, H, W = 2, 4, 2, 16, 16

    x = jax.random.normal(kx, (N, CH_IN, H, W), dtype=jnp.float32)
    conv_w = jax.random.normal(kw, (CH_OUT, CH_IN, 3, 3), dtype=jnp.float32) * 0.1
    conv_b = jax.random.normal(kb, (CH_OUT,), dtype=jnp.float32) * 0.1
    bn_gamma = jnp.ones((CH_OUT,), jnp.float32)   # PyTorch BN default init
    bn_beta = jnp.zeros((CH_OUT,), jnp.float32)

    out = up_conv_forward(x, conv_w, conv_b, bn_gamma, bn_beta)
    out = jax.block_until_ready(out)

    ref = up_conv_reference(x, conv_w, conv_b, bn_gamma, bn_beta)
    assert out.shape == (N, CH_OUT, 2 * H, 2 * W), out.shape
    max_err = float(jnp.max(jnp.abs(out - ref)))
    assert jnp.allclose(out, ref, atol=1e-4, rtol=1e-4), max_err

    print("KERNEL_OK")
</pallas_src>

<mosaic_0001>
module attributes {stable_mosaic.version = 11 : i64} {
  func.func @_up_conv_phase_kernel(%arg0: i32, %arg1: i32, %arg2: memref<1x4x290xf32, #tpu.memory_space<vmem>>, %arg3: memref<2x2x2x16xf32, #tpu.memory_space<vmem>>, %arg4: memref<1x2x2x2x256xf32, #tpu.memory_space<vmem>>, %arg5: memref<1x2x2x1xf32, #tpu.memory_space<vmem>>) attributes {dimension_semantics = [#tpu.dimension_semantics<parallel>, #tpu.dimension_semantics<parallel>], iteration_bounds = array<i64: 2, 1>, scalar_prefetch = 0 : i64, scratch_operands = 0 : i64, tpu.core_type = #tpu.core_type<tc>, window_params = [{transform_indices = @transform_0, window_bounds = array<i64: 1, 4, 290>}, {transform_indices = @transform_1, window_bounds = array<i64: 2, 2, 2, 16>}, {transform_indices = @transform_2, window_bounds = array<i64: 1, 2, 2, 2, 256>}, {transform_indices = @transform_3, window_bounds = array<i64: 1, 2, 2, 1>}]} {
    %0 = tpu.iota {dimensions = array<i32: 1>} : vector<1x256xi32>
    %c16_i32 = arith.constant 16 : i32
    %c0_i32 = arith.constant 0 : i32
    %1 = arith.cmpi eq, %c16_i32, %c0_i32 : i32
    %c1_i32 = arith.constant 1 : i32
    %2 = arith.select %1, %c1_i32, %c16_i32 : i32
    %3 = vector.broadcast %2 : i32 to vector<1x256xi32>
    %4 = arith.remsi %0, %3 : vector<1x256xi32>
    %c0_i32_0 = arith.constant 0 : i32
    %5 = vector.broadcast %c0_i32_0 : i32 to vector<1x256xi32>
    %6 = arith.cmpi ne, %4, %5 : vector<1x256xi32>
    %c0_i32_1 = arith.constant 0 : i32
    %7 = vector.broadcast %c0_i32_1 : i32 to vector<1x256xi32>
    %8 = arith.cmpi slt, %4, %7 : vector<1x256xi32>
    %c0_i32_2 = arith.constant 0 : i32
    %9 = arith.cmpi slt, %2, %c0_i32_2 : i32
    %10 = vector.broadcast %9 : i1 to vector<1x256xi1>
    %11 = vector.broadcast %10 : vector<1x256xi1> to vector<1x256xi1>
    %12 = arith.xori %8, %11 : vector<1x256xi1>
    %13 = arith.andi %12, %6 : vector<1x256xi1>
    %14 = vector.broadcast %2 : i32 to vector<1x256xi32>
    %15 = arith.addi %4, %14 : vector<1x256xi32>
    %16 = arith.select %13, %15, %4 : vector<1x256xi1>, vector<1x256xi32>
    %c0_i32_3 = arith.constant 0 : i32
    %17 = vector.broadcast %c0_i32_3 : i32 to vector<1x256xi32>
    %18 = arith.cmpi eq, %16, %17 : vector<1x256xi32>
    %c15_i32 = arith.constant 15 : i32
    %19 = vector.broadcast %c15_i32 : i32 to vector<1x256xi32>
    %20 = arith.cmpi eq, %16, %19 : vector<1x256xi32>
    %c0 = arith.constant 0 : index
    %c0_4 = arith.constant 0 : index
    %c0_5 = arith.constant 0 : index
    %21 = vector.load %arg2[%c0, %c0_4, %c0_5] : memref<1x4x290xf32, #tpu.memory_space<vmem>>, vector<1x4x256xf32>
    %22 = vector.shape_cast %21 : vector<1x4x256xf32> to vector<4x256xf32>
    %cst = arith.constant 0.000000e+00 : f32
    %23 = vector.shape_cast %18 : vector<1x256xi1> to vector<1x256xi1>
    %24 = vector.broadcast %23 : vector<1x256xi1> to vector<4x256xi1>
    %25 = vector.broadcast %cst : f32 to vector<4x256xf32>
    %26 = arith.select %24, %25, %22 : vector<4x256xi1>, vector<4x256xf32>
    %c0_6 = arith.constant 0 : index
    %c0_7 = arith.constant 0 : index
    %c1 = arith.constant 1 : index
    %27 = vector.load %arg2[%c0_6, %c0_7, %c1] : memref<1x4x290xf32, #tpu.memory_space<vmem>>, vector<1x4x256xf32>
    %28 = vector.shape_cast %27 : vector<1x4x256xf32> to vector<4x256xf32>
    %c0_8 = arith.constant 0 : index
    %c0_9 = arith.constant 0 : index
    %c2 = arith.constant 2 : index
    %29 = vector.load %arg2[%c0_8, %c0_9, %c2] : memref<1x4x290xf32, #tpu.memory_space<vmem>>, vector<1x4x256xf32>
    %30 = vector.shape_cast %29 : vector<1x4x256xf32> to vector<4x256xf32>
    %cst_10 = arith.constant 0.000000e+00 : f32
    %31 = vector.shape_cast %20 : vector<1x256xi1> to vector<1x256xi1>
    %32 = vector.broadcast %31 : vector<1x256xi1> to vector<4x256xi1>
    %33 = vector.broadcast %cst_10 : f32 to vector<4x256xf32>
    %34 = arith.select %32, %33, %30 : vector<4x256xi1>, vector<4x256xf32>
    %c0_11 = arith.constant 0 : index
    %c0_12 = arith.constant 0 : index
    %c16 = arith.constant 16 : index
    %35 = vector.load %arg2[%c0_11, %c0_12, %c16] : memref<1x4x290xf32, #tpu.memory_space<vmem>>, vector<1x4x256xf32>
    %36 = vector.shape_cast %35 : vector<1x4x256xf32> to vector<4x256xf32>
    %cst_13 = arith.constant 0.000000e+00 : f32
    %37 = vector.shape_cast %18 : vector<1x256xi1> to vector<1x256xi1>
    %38 = vector.broadcast %37 : vector<1x256xi1> to vector<4x256xi1>
    %39 = vector.broadcast %cst_13 : f32 to vector<4x256xf32>
    %40 = arith.select %38, %39, %36 : vector<4x256xi1>, vector<4x256xf32>
    %c0_14 = arith.constant 0 : index
    %c0_15 = arith.constant 0 : index
    %c17 = arith.constant 17 : index
    %41 = vector.load %arg2[%c0_14, %c0_15, %c17] : memref<1x4x290xf32, #tpu.memory_space<vmem>>, vector<1x4x256xf32>
    %42 = vector.shape_cast %41 : vector<1x4x256xf32> to vector<4x256xf32>
    %c0_16 = arith.constant 0 : index
    %c0_17 = arith.constant 0 : index
    %c18 = arith.constant 18 : index
    %43 = vector.load %arg2[%c0_16, %c0_17, %c18] : memref<1x4x290xf32, #tpu.memory_space<vmem>>, vector<1x4x256xf32>
    %44 = vector.shape_cast %43 : vector<1x4x256xf32> to vector<4x256xf32>
    %cst_18 = arith.constant 0.000000e+00 : f32
    %45 = vector.shape_cast %20 : vector<1x256xi1> to vector<1x256xi1>
    %46 = vector.broadcast %45 : vector<1x256xi1> to vector<4x256xi1>
    %47 = vector.broadcast %cst_18 : f32 to vector<4x256xf32>
    %48 = arith.select %46, %47, %44 : vector<4x256xi1>, vector<4x256xf32>
    %c0_19 = arith.constant 0 : index
    %c0_20 = arith.constant 0 : index
    %c32 = arith.constant 32 : index
    %49 = vector.load %arg2[%c0_19, %c0_20, %c32] : memref<1x4x290xf32, #tpu.memory_space<vmem>>, vector<1x4x256xf32>
    %50 = vector.shape_cast %49 : vector<1x4x256xf32> to vector<4x256xf32>
    %cst_21 = arith.constant 0.000000e+00 : f32
    %51 = vector.shape_cast %18 : vector<1x256xi1> to vector<1x256xi1>
    %52 = vector.broadcast %51 : vector<1x256xi1> to vector<4x256xi1>
    %53 = vector.broadcast %cst_21 : f32 to vector<4x256xf32>
    %54 = arith.select %52, %53, %50 : vector<4x256xi1>, vector<4x256xf32>
    %c0_22 = arith.constant 0 : index
    %c0_23 = arith.constant 0 : index
    %c33 = arith.constant 33 : index
    %55 = vector.load %arg2[%c0_22, %c0_23, %c33] : memref<1x4x290xf32, #tpu.memory_space<vmem>>, vector<1x4x256xf32>
    %56 = vector.shape_cast %55 : vector<1x4x256xf32> to vector<4x256xf32>
    %c0_24 = arith.constant 0 : index
    %c0_25 = arith.constant 0 : index
    %c34 = arith.constant 34 : index
    %57 = vector.load %arg2[%c0_24, %c0_25, %c34] : memref<1x4x290xf32, #tpu.memory_space<vmem>>, vector<1x4x256xf32>
    %58 = vector.shape_cast %57 : vector<1x4x256xf32> to vector<4x256xf32>
    %cst_26 = arith.constant 0.000000e+00 : f32
    %59 = vector.shape_cast %20 : vector<1x256xi1> to vector<1x256xi1>
    %60 = vector.broadcast %59 : vector<1x256xi1> to vector<4x256xi1>
    %61 = vector.broadcast %cst_26 : f32 to vector<4x256xf32>
    %62 = arith.select %60, %61, %58 : vector<4x256xi1>, vector<4x256xf32>
    %c0_27 = arith.constant 0 : index
    %c0_28 = arith.constant 0 : index
    %c0_29 = arith.constant 0 : index
    %c0_30 = arith.constant 0 : index
    %63 = vector.load %arg3[%c0_27, %c0_28, %c0_29, %c0_30] : memref<2x2x2x16xf32, #tpu.memory_space<vmem>>, vector<2x2x2x16xf32>
    %64 = tpu.concatenate %26, %28, %40, %42 in 0 : vector<4x256xf32>, vector<4x256xf32>, vector<4x256xf32>, vector<4x256xf32> -> vector<16x256xf32>
    %65 = vector.extract_strided_slice %63 {offsets = [0, 0, 0, 0], sizes = [1, 1, 2, 16], strides = [1, 1, 1, 1]} : vector<2x2x2x16xf32> to vector<1x1x2x16xf32>
    %66 = vector.shape_cast %65 : vector<1x1x2x16xf32> to vector<2x16xf32>
    %cst_31 = arith.constant dense<0.000000e+00> : vector<2x256xf32>
    %67 = tpu.matmul %66, %64, %cst_31 {dimension_numbers = #tpu.dot_dimension_numbers<[1], [0], [0], [1], [0, 0, 1, 1], [], []>} : vector<2x16xf32>, vector<16x256xf32>, vector<2x256xf32> -> vector<2x256xf32>
    %c0_32 = arith.constant 0 : index
    %c0_33 = arith.constant 0 : index
    %c0_34 = arith.constant 0 : index
    %c0_35 = arith.constant 0 : index
    %c0_36 = arith.constant 0 : index
    %68 = vector.load %arg4[%c0_32, %c0_33, %c0_34, %c0_35, %c0_36] : memref<1x2x2x2x256xf32, #tpu.memory_space<vmem>>, vector<1x1x1x2x256xf32>
    %69 = vector.shape_cast %68 : vector<1x1x1x2x256xf32> to vector<2x256xf32>
    %70 = vector.shape_cast %67 : vector<2x256xf32> to vector<1x1x1x2x256xf32>
    tpu.vector_store %arg4[%c0_32, %c0_33, %c0_34, %c0_35, %c0_36], %70 {strides = array<i32>} : memref<1x2x2x2x256xf32, #tpu.memory_space<vmem>>, vector<1x1x1x2x256xf32>,
    %cst_37 = arith.constant dense<0.000000e+00> : vector<2xf32>
    %71 = vector.multi_reduction <add>, %67, %cst_37 [1] : vector<2x256xf32> to vector<2xf32>
    %72 = vector.shape_cast %71 : vector<2xf32> to vector<2x1xf32>
    %73 = arith.mulf %67, %67 : vector<2x256xf32>
    %cst_38 = arith.constant dense<0.000000e+00> : vector<2xf32>
    %74 = vector.multi_reduction <add>, %73, %cst_38 [1] : vector<2x256xf32> to vector<2xf32>
    %75 = vector.shape_cast %74 : vector<2xf32> to vector<2x1xf32>
    %76 = tpu.concatenate %28, %34, %42, %48 in 0 : vector<4x256xf32>, vector<4x256xf32>, vector<4x256xf32>, vector<4x256xf32> -> vector<16x256xf32>
    %77 = vector.extract_strided_slice %63 {offsets = [0, 1, 0, 0], sizes = [1, 1, 2, 16], strides = [1, 1, 1, 1]} : vector<2x2x2x16xf32> to vector<1x1x2x16xf32>
    %78 = vector.shape_cast %77 : vector<1x1x2x16xf32> to vector<2x16xf32>
    %cst_39 = arith.constant dense<0.000000e+00> : vector<2x256xf32>
    %79 = tpu.matmul %78, %76, %cst_39 {dimension_numbers = #tpu.dot_dimension_numbers<[1], [0], [0], [1], [0, 0, 1, 1], [], []>} : vector<2x16xf32>, vector<16x256xf32>, vector<2x256xf32> -> vector<2x256xf32>
    %c0_40 = arith.constant 0 : index
    %c0_41 = arith.constant 0 : index
    %c1_42 = arith.constant 1 : index
    %c0_43 = arith.constant 0 : index
    %c0_44 = arith.constant 0 : index
    %80 = vector.load %arg4[%c0_40, %c0_41, %c1_42, %c0_43, %c0_44] : memref<1x2x2x2x256xf32, #tpu.memory_space<vmem>>, vector<1x1x1x2x256xf32>
    %81 = vector.shape_cast %80 : vector<1x1x1x2x256xf32> to vector<2x256xf32>
    %82 = vector.shape_cast %79 : vector<2x256xf32> to vector<1x1x1x2x256xf32>
    tpu.vector_store %arg4[%c0_40, %c0_41, %c1_42, %c0_43, %c0_44], %82 {strides = array<i32>} : memref<1x2x2x2x256xf32, #tpu.memory_space<vmem>>, vector<1x1x1x2x256xf32>,
    %cst_45 = arith.constant dense<0.000000e+00> : vector<2xf32>
    %83 = vector.multi_reduction <add>, %79, %cst_45 [1] : vector<2x256xf32> to vector<2xf32>
    %84 = vector.shape_cast %83 : vector<2xf32> to vector<2x1xf32>
    %85 = arith.mulf %79, %79 : vector<2x256xf32>
    %cst_46 = arith.constant dense<0.000000e+00> : vector<2xf32>
    %86 = vector.multi_reduction <add>, %85, %cst_46 [1] : vector<2x256xf32> to vector<2xf32>
    %87 = vector.shape_cast %86 : vector<2xf32> to vector<2x1xf32>
    %88 = arith.addf %72, %84 : vector<2x1xf32>
    %89 = arith.addf %75, %87 : vector<2x1xf32>
    %90 = tpu.concatenate %40, %42, %54, %56 in 0 : vector<4x256xf32>, vector<4x256xf32>, vector<4x256xf32>, vector<4x256xf32> -> vector<16x256xf32>
    %91 = vector.extract_strided_slice %63 {offsets = [1, 0, 0, 0], sizes = [1, 1, 2, 16], strides = [1, 1, 1, 1]} : vector<2x2x2x16xf32> to vector<1x1x2x16xf32>
    %92 = vector.shape_cast %91 : vector<1x1x2x16xf32> to vector<2x16xf32>
    %cst_47 = arith.constant dense<0.000000e+00> : vector<2x256xf32>
    %93 = tpu.matmul %92, %90, %cst_47 {dimension_numbers = #tpu.dot_dimension_numbers<[1], [0], [0], [1], [0, 0, 1, 1], [], []>} : vector<2x16xf32>, vector<16x256xf32>, vector<2x256xf32> -> vector<2x256xf32>
    %c0_48 = arith.constant 0 : index
    %c1_49 = arith.constant 1 : index
    %c0_50 = arith.constant 0 : index
    %c0_51 = arith.constant 0 : index
    %c0_52 = arith.constant 0 : index
    %94 = vector.load %arg4[%c0_48, %c1_49, %c0_50, %c0_51, %c0_52] : memref<1x2x2x2x256xf32, #tpu.memory_space<vmem>>, vector<1x1x1x2x256xf32>
    %95 = vector.shape_cast %94 : vector<1x1x1x2x256xf32> to vector<2x256xf32>
    %96 = vector.shape_cast %93 : vector<2x256xf32> to vector<1x1x1x2x256xf32>
    tpu.vector_store %arg4[%c0_48, %c1_49, %c0_50, %c0_51, %c0_52], %96 {strides = array<i32>} : memref<1x2x2x2x256xf32, #tpu.memory_space<vmem>>, vector<1x1x1x2x256xf32>,
    %cst_53 = arith.constant dense<0.000000e+00> : vector<2xf32>
    %97 = vector.multi_reduction <add>, %93, %cst_53 [1] : vector<2x256xf32> to vector<2xf32>
    %98 = vector.shape_cast %97 : vector<2xf32> to vector<2x1xf32>
    %99 = arith.mulf %93, %93 : vector<2x256xf32>
    %cst_54 = arith.constant dense<0.000000e+00> : vector<2xf32>
    %100 = vector.multi_reduction <add>, %99, %cst_54 [1] : vector<2x256xf32> to vector<2xf32>
    %101 = vector.shape_cast %100 : vector<2xf32> to vector<2x1xf32>
    %102 = arith.addf %88, %98 : vector<2x1xf32>
    %103 = arith.addf %89, %101 : vector<2x1xf32>
    %104 = tpu.concatenate %42, %48, %56, %62 in 0 : vector<4x256xf32>, vector<4x256xf32>, vector<4x256xf32>, vector<4x256xf32> -> vector<16x256xf32>
    %105 = vector.extract_strided_slice %63 {offsets = [1, 1, 0, 0], sizes = [1, 1, 2, 16], strides = [1, 1, 1, 1]} : vector<2x2x2x16xf32> to vector<1x1x2x16xf32>
    %106 = vector.shape_cast %105 : vector<1x1x2x16xf32> to vector<2x16xf32>
    %cst_55 = arith.constant dense<0.000000e+00> : vector<2x256xf32>
    %107 = tpu.matmul %106, %104, %cst_55 {dimension_numbers = #tpu.dot_dimension_numbers<[1], [0], [0], [1], [0, 0, 1, 1], [], []>} : vector<2x16xf32>, vector<16x256xf32>, vector<2x256xf32> -> vector<2x256xf32>
    %c0_56 = arith.constant 0 : index
    %c1_57 = arith.constant 1 : index
    %c1_58 = arith.constant 1 : index
    %c0_59 = arith.constant 0 : index
    %c0_60 = arith.constant 0 : index
    %108 = vector.load %arg4[%c0_56, %c1_57, %c1_58, %c0_59, %c0_60] : memref<1x2x2x2x256xf32, #tpu.memory_space<vmem>>, vector<1x1x1x2x256xf32>
    %109 = vector.shape_cast %108 : vector<1x1x1x2x256xf32> to vector<2x256xf32>
    %110 = vector.shape_cast %107 : vector<2x256xf32> to vector<1x1x1x2x256xf32>
    tpu.vector_store %arg4[%c0_56, %c1_57, %c1_58, %c0_59, %c0_60], %110 {strides = array<i32>} : memref<1x2x2x2x256xf32, #tpu.memory_space<vmem>>, vector<1x1x1x2x256xf32>,
    %cst_61 = arith.constant dense<0.000000e+00> : vector<2xf32>
    %111 = vector.multi_reduction <add>, %107, %cst_61 [1] : vector<2x256xf32> to vector<2xf32>
    %112 = vector.shape_cast %111 : vector<2xf32> to vector<2x1xf32>
    %113 = arith.mulf %107, %107 : vector<2x256xf32>
    %cst_62 = arith.constant dense<0.000000e+00> : vector<2xf32>
    %114 = vector.multi_reduction <add>, %113, %cst_62 [1] : vector<2x256xf32> to vector<2xf32>
    %115 = vector.shape_cast %114 : vector<2xf32> to vector<2x1xf32>
    %116 = arith.addf %102, %112 : vector<2x1xf32>
    %117 = arith.addf %103, %115 : vector<2x1xf32>
    %c0_63 = arith.constant 0 : index
    %c0_64 = arith.constant 0 : index
    %c0_65 = arith.constant 0 : index
    %c0_66 = arith.constant 0 : index
    %118 = vector.load %arg5[%c0_63, %c0_64, %c0_65, %c0_66] : memref<1x2x2x1xf32, #tpu.memory_space<vmem>>, vector<1x1x2x1xf32>
    %119 = vector.shape_cast %118 : vector<1x1x2x1xf32> to vector<2x1xf32>
    %120 = vector.shape_cast %116 : vector<2x1xf32> to vector<1x1x2x1xf32>
    tpu.vector_store %arg5[%c0_63, %c0_64, %c0_65, %c0_66], %120 {strides = array<i32>} : memref<1x2x2x1xf32, #tpu.memory_space<vmem>>, vector<1x1x2x1xf32>,
    %c0_67 = arith.constant 0 : index
    %c1_68 = arith.constant 1 : index
    %c0_69 = arith.constant 0 : index
    %c0_70 = arith.constant 0 : index
    %121 = vector.load %arg5[%c0_67, %c1_68, %c0_69, %c0_70] : memref<1x2x2x1xf32, #tpu.memory_space<vmem>>, vector<1x1x2x1xf32>
    %122 = vector.shape_cast %121 : vector<1x1x2x1xf32> to vector<2x1xf32>
    %123 = vector.shape_cast %117 : vector<2x1xf32> to vector<1x1x2x1xf32>
    tpu.vector_store %arg5[%c0_67, %c1_68, %c0_69, %c0_70], %123 {strides = array<i32>} : memref<1x2x2x1xf32, #tpu.memory_space<vmem>>, vector<1x1x2x1xf32>,
    return
  }
  func.func @transform_0(%arg0: i32, %arg1: i32) -> (i32, i32, i32) {
    %c0_i32 = arith.constant 0 : i32
    %c0_i32_0 = arith.constant 0 : i32
    %c0_i32_1 = arith.constant 0 : i32
    return %arg0, %c0_i32, %c0_i32_0 : i32, i32, i32
  }
  func.func @transform_1(%arg0: i32, %arg1: i32) -> (i32, i32, i32, i32) {
    %c0_i32 = arith.constant 0 : i32
    %c0_i32_0 = arith.constant 0 : i32
    %c0_i32_1 = arith.constant 0 : i32
    %c0_i32_2 = arith.constant 0 : i32
    return %c0_i32, %c0_i32_0, %arg1, %c0_i32_1 : i32, i32, i32, i32
  }
  func.func @transform_2(%arg0: i32, %arg1: i32) -> (i32, i32, i32, i32, i32) {
    %c0_i32 = arith.constant 0 : i32
    %c0_i32_0 = arith.constant 0 : i32
    %c0_i32_1 = arith.constant 0 : i32
    %c0_i32_2 = arith.constant 0 : i32
    return %arg0, %c0_i32, %c0_i32_0, %arg1, %c0_i32_1 : i32, i32, i32, i32, i32
  }
  func.func @transform_3(%arg0: i32, %arg1: i32) -> (i32, i32, i32, i32) {
    %c0_i32 = arith.constant 0 : i32
    %c0_i32_0 = arith.constant 0 : i32
    %c0_i32_1 = arith.constant 0 : i32
    return %arg0, %c0_i32, %arg1, %c0_i32_0 : i32, i32, i32, i32
  }
}

</mosaic_0001>

<bundles_post_ra>
// kernel: up_conv_forward.1
= control target key start
LH: loop header
LB: loop body
LE: loop exit
PB: predicated region body
PF: predicated region fallthrough
CT: control target
= control target key end

     0   :  { %s1280_s12 = smov 0   ;;  %s1282_s13 = smov 0   ;;  %s1524_s0 = inlined_call_operand.vmem [shape: f32[2,4,290], index: 0, kind: input, shape index: {}]   ;;  %s1525_s1 = inlined_call_operand.vmem [shape: f32[2,2,2,16], index: 1, kind: input, shape index: {}]   ;;  %s1526_s2 = inlined_call_operand.vmem [shape: f32[2,2,2,2,256], index: 2, kind: output, shape index: {0}]   ;;  %s1527_s3 = inlined_call_operand.vmem [shape: f32[2,2,2,1], index: 3, kind: output, shape index: {1}]  }
   0x1   :  { %s1284_s14 = smov 0  }
   0x2 LB: > { %s26_s15 = sadd.s32 1, %s1243_s13  ;;  %p1058_p0 = scmp.ge.s32.totalorder %s1247_s14, 1  ;;  %s1247_s14 = sphi %s1284_s14, %s14_s14   ;;  %s1243_s13 = sphi %s1282_s13, %s1537_s13   ;;  %s1239_s12 = sphi %s1280_s12, %s1536_s12  }
   0x3   : > { %p28_p1 = scmp.ge.s32.totalorder %s26_s15, 2  ;;  %p165_p2 = scmp.lt.s32.totalorder %s1247_s14, 3 }
   0x5   : > { %s1539_s15 = smov (%p28_p1, %s26_s15), 0  ;;  %p166_p3 = pnand %p1058_p0, %p165_p2 }
   0x6   : > { %p205_p4 = scmp.lt.s32.totalorder (!%p166_p3), %s1239_s12, 1  ;;  %s1249_s20 = smov (!%p166_p3), 110   ;;  %v231_v5 = vlaneseq (!%p166_p3)  ;;  %vm310_vm0 = vcmask (!%p166_p3), 900096   ;;  %vm284_vm1 = vcmask (!%p166_p3), 1031168   ;;  %vm336_vm4 = vcmask (!%p166_p3), 769024  }
   0x7   : > { %169 = sbr.rel (%p166_p3) target bundleno = 778 (0x30a), region = 28  ;;  %s1250_s21 = smov (!%p166_p3), 126   ;;  %vm371_vm5 = vcmask (!%p166_p3), 1043456   ;;  %vm297_vm6 = vcmask (!%p166_p3), 916480   ;;  %vm484_vm7 = vcmask (!%p166_p3), 7168   ;;  %vm753_vm8 = vcmask (!%p166_p3), 138240  }
   0x8   : > { %s1251_s22 = smov (!%p166_p3), 94   ;;  %s1252_s23 = smov (!%p166_p3), 112   ;;  %v1320_v6 = vand.u32 (!%p166_p3), 127, %v231_v5  ;;  %vm355_vm10 = vcmask (!%p166_p3), 1039360   ;;  %vm366_vm11 = vcmask (!%p166_p3), 908288   ;;  %vm323_vm12 = vcmask (!%p166_p3), 785408  }
   0x9   : > { %s1253_s24 = smov (!%p166_p3), 1   ;;  %s1254_s25 = smov (!%p166_p3), 17   ;;  %vm641_vm13 = vcmask (!%p166_p3), 777216   ;;  %vm376_vm15 = vcmask (!%p166_p3), 130048  }
   0xa   : > { %v1323_v7 = vadd.s32 (!%p166_p3), 128, %v1320_v6  ;;  %v238_v11 = vand.u32 (!%p166_p3), 15, %v1320_v6  ;;  %s1255_s26 = smov (!%p166_p3), 127   ;;  %s1256_s27 = smov (!%p166_p3), 111  }
   0xb   : > { %s1257_s28 = smov (!%p166_p3), 96   ;;  %s1258_s29 = smov (!%p166_p3), 95  }
   0xc   : > { %v245_v10 = vand.u32 (!%p166_p3), 15, %v1323_v7  ;;  %vm1335_vm3 = vcmp.eq.s32.totalorder (!%p166_p3), %v238_v11, 15  ;;  %vm1433_vm14 = vcmp.eq.s32.totalorder (!%p166_p3), %v238_v11, 0 }
   0xe   : > { %s1541_s12 = smov (!%p205_p4, %s1239_s12), 1  ;;  %vm1329_vm2 = vcmp.eq.s32.totalorder %v245_v10, 15  ;;  %vm1368_vm9 = vcmp.eq.s32.totalorder %v245_v10, 0 }
   0xf   : > { %s1096_s16 = smul.u32 12, %s1541_s12  ;;  %s1075_s11 = sshll.u32 %s1541_s12, 4 }
  0x10   : > { %s1489_s18 = scalar_lea.vmem %s1526_s2, %s1075_s11 }
  0x11   : > { %s209_s19 = scalar_lea.vmem %s1524_s0, %s1096_s16 }
  0x12   : > { %v1304_v0 = vld [vmem:[%s209_s19 + $0x8] sm:$0xf]  ;;  %v1306_v1 = vld [vmem:[%s209_s19] sm:$0xff]  ;;  %s1076_s19 = sshll.u32 %s1541_s12, 2 }
  0x13   : > { %308 = vrot.lane.b32.xlu1 %v1304_v0, %s1249_s20  ;;  %282 = vrot.lane.b32.xlu0 %v1304_v0, %s1250_s21  ;;  %v1312_v2 = vcombine.high %v1306_v1, %v1306_v1  ;;  %v348_v44 = vcombine.low %v1304_v0, %v1304_v0 }
  0x15   : > { %v1137_v3 = vpack.i.bf16 %v1312_v2, %v1306_v1  ;;  %v1147_v4 = vpack.i.bf16 %v1304_v0, %v1312_v2  ;;  %v1172_v46 = vpack.i.bf16 %v348_v44, %v1306_v1 }
  0x17   : > { %1138 = vrot.lane.b32.xlu1 %v1137_v3, %s1249_s20  ;;  %1133 = vrot.lane.b32.xlu0 %v1137_v3, %s1250_s21 }
  0x1b   : > { %1143 = vrot.lane.b32.xlu0 %v1137_v3, %s1251_s22  ;;  %334 = vrot.lane.b32.xlu1 %v1304_v0, %s1251_s22  ;;  %s230_s22 = scalar_lea.vmem %s1527_s3, %s1076_s19 }
  0x1f   : > { %1148 = vrot.lane.b32.xlu0 %v1147_v4, %s1252_s23  ;;  %291 = vrot.lane.b32.xlu1 %v1306_v1, %s1252_s23 }
  0x85   : > { %v309_v8 = vpop.permute.xlu1 %308  ;;  %v283_v9 = vpop.permute.xlu0 %282 }
  0x89   : > { %v1139_v12 = vpop.permute.xlu1 %1138  ;;  %v1134_v13 = vpop.permute.xlu0 %1133 }
  0x8a   : > { %v1141_v16 = vunpack.i.h.bf16 %v1139_v12  ;;  %v1140_v17 = vunpack.i.l.bf16 %v1139_v12  ;;  %v1136_v18 = vunpack.i.h.bf16 %v1134_v13  ;;  %v1135_v19 = vunpack.i.l.bf16 %v1134_v13 }
  0x8c   : > { %v312_v20 = vsel %vm310_vm0, %v1141_v16, %v309_v8  ;;  %v311_v21 = vsel %vm310_vm0, %v1140_v17, %v1141_v16  ;;  %v286_v22 = vsel %vm284_vm1, %v1136_v18, %v283_v9  ;;  %v285_v23 = vsel %vm284_vm1, %v1135_v19, %v1136_v18 }
  0x8d   : > { %v1144_v24 = vpop.permute.xlu0 %1143  ;;  %v335_v25 = vpop.permute.xlu1 %334  ;;  %v315_v26 = vsel %vm1335_vm3, 0.0, %v311_v21  ;;  %v316_v27 = vsel %vm1329_vm2, 0.0, %v312_v20  ;;  %v289_v28 = vsel %vm1335_vm3, 0.0, %v285_v23  ;;  %v290_v29 = vsel %vm1329_vm2, 0.0, %v286_v22 }
  0x8e   : > { %v1146_v30 = vunpack.i.h.bf16 %v1144_v24  ;;  %v1145_v31 = vunpack.i.l.bf16 %v1144_v24  ;;  %v492_v32 = vrot.slane %v315_v26, 4  ;;  %v493_v33 = vrot.slane %v316_v27, 4 }
  0x8f   : > { %v478_v34 = vrot.slane %v289_v28, 4  ;;  %v479_v35 = vrot.slane %v290_v29, 4  ;;  %v271_v17 = vsel %vm1368_vm9, 0.0, %v1312_v2  ;;  %vm463_vm0 = vcmask 1041408  }
  0x90   : > { %v337_v36 = vsel %vm336_vm4, %v1145_v31, %v1146_v30  ;;  %v338_v37 = vsel %vm336_vm4, %v1146_v30, %v335_v25  ;;  %v1157_v38 = vpack.i.bf16 %v493_v33, %v492_v32  ;;  %vm903_vm1 = vcmask 1024  }
  0x91   : > { %v342_v39 = vsel %vm1329_vm2, 0.0, %v338_v37  ;;  %v1152_v40 = vpack.i.bf16 %v479_v35, %v478_v34  ;;  %v341_v41 = vsel %vm1335_vm3, 0.0, %v337_v36  ;;  %v292_v47 = vpop.permute.xlu1 %291  ;;  %v1149_v48 = vpop.permute.xlu0 %1148 }
  0x92   : > { %v761_v42 = vrot.slane %v342_v39, 4  ;;  %1158 = vrot.lane.b32.xlu0 %v1157_v38, %s1253_s24  ;;  %v760_v43 = vrot.slane %v341_v41, 4  ;;  %v1360_v50 = vunpack.i.h.bf16 %v1149_v48  ;;  %v1150_v53 = vunpack.i.l.bf16 %v1149_v48 }
  0x93   : > { %1153 = vrot.lane.b32.xlu1 %v1152_v40, %s1253_s24 }
  0x94   : > { %v1167_v45 = vpack.i.bf16 %v761_v42, %v760_v43  ;;  %v1375_v5 = vsel %vm297_vm6, %v292_v47, %v1150_v53  ;;  %v299_v13 = vsel %vm297_vm6, %v1150_v53, %v1360_v50 }
  0x95   : > { %v303_v29 = vsel %vm1368_vm9, 0.0, %v299_v13 }
  0x96   : > { %1163 = vrot.lane.b32.xlu0 %v1157_v38, %s1254_s25 }
  0x97   : > { %1168 = vrot.lane.b32.xlu1 %v1167_v45, %s1254_s25 }
  0x9a   : > { %1173 = vrot.lane.b32.xlu0 %v1172_v46, %s1255_s26 }
  0x9b   : > { %1178 = vrot.lane.b32.xlu1 %v1172_v46, %s1256_s27 }
  0x9e   : > { %1183 = vrot.lane.b32.xlu0 %v1147_v4, %s1257_s28  ;;  %v347_v4 = vcombine.low %v1306_v1, %v1306_v1 }
  0x9f   : > { %317 = vrot.lane.b32.xlu1 %v1306_v1, %s1257_s28 }
  0xa3   : > { %1188 = vrot.lane.b32.xlu1 %v1172_v46, %s1258_s29 }
 0x104   : > { %v1159_v49 = vpop.permute.xlu0 %1158 }
 0x105   : > { %v1161_v51 = vunpack.i.h.bf16 %v1159_v49  ;;  %v1154_v52 = vpop.permute.xlu1 %1153  ;;  %v1160_v54 = vunpack.i.l.bf16 %v1159_v49 }
 0x106   : > { %v1155_v55 = vunpack.i.l.bf16 %v1154_v52  ;;  %v1156_v56 = vunpack.i.h.bf16 %v1154_v52 }
 0x107   : > { %v507_v57 = vsel %vm371_vm5, %v1360_v50, %v1161_v51  ;;  %v498_v8 = vsel %vm484_vm7, %v1160_v54, %v1161_v51  ;;  %v505_v15 = vsel %vm371_vm5, %v1375_v5, %v1160_v54 }
 0x108   : > { %v1164_v58 = vpop.permute.xlu0 %1163  ;;  %v502_v59 = vsel %vm371_vm5, %v1306_v1, %v1155_v55  ;;  %v485_v7 = vsel %vm484_vm7, %v1155_v55, %v1156_v56  ;;  %v504_v22 = vsel %vm371_vm5, %v1304_v0, %v1156_v56  ;;  %v506_v26 = vsel %vm371_vm5, %v299_v13, %v498_v8 }
 0x109   : > { %v1166_v61 = vunpack.i.h.bf16 %v1164_v58  ;;  %v1165_v62 = vunpack.i.l.bf16 %v1164_v58  ;;  %v1169_v63 = vpop.permute.xlu1 %1168  ;;  %v1192_v3 = vpack.i.bf16 %v502_v59, %v507_v57  ;;  %v503_v25 = vsel %vm371_vm5, %v1312_v2, %v485_v7 }
 0x10a   : > { %v1171_v10 = vunpack.i.h.bf16 %v1169_v63  ;;  %v1170_v12 = vunpack.i.l.bf16 %v1169_v63  ;;  %v1197_v32 = vpack.i.bf16 %v503_v25, %v347_v4  ;;  %v1212_v33 = vpack.i.bf16 %v506_v26, %v504_v22  ;;  %v343_v26 = vld [vmem:[%s1525_s1] sm:$0x3] }
 0x10b   : > { %v754_v9 = vsel %vm753_vm8, %v1165_v62, %v1166_v61  ;;  %1193 = vrot.lane.b32.xlu0 %v1192_v3, %s1255_s26  ;;  %v772_v36 = vsel %vm371_vm5, %v1304_v0, %v1166_v61  ;;  %v770_v39 = vsel %vm371_vm5, %v1306_v1, %v1165_v62  ;;  %v270_v62 = vsel %vm1433_vm14, 0.0, %v1306_v1 }
 0x10c   : > { %v1383_v14 = vpop.permute.xlu0 %1173  ;;  %v771_v16 = vsel %vm371_vm5, %v1312_v2, %v754_v9  ;;  %v766_v27 = vsel %vm753_vm8, %v1170_v12, %v1171_v10  ;;  %v1259_v2 = vmov 0.0   ;;  %v775_v40 = vsel %vm371_vm5, %v1360_v50, %v1171_v10 }
 0x10d   : > { %v1176_v18 = vunpack.i.h.bf16 %v1383_v14  ;;  %v1175_v19 = vunpack.i.l.bf16 %v1383_v14  ;;  %v1179_v20 = vpop.permute.xlu1 %1178  ;;  %v1207_v21 = vpack.i.bf16 %v771_v16, %v347_v4  ;;  %444 = vmatprep.mubr.f32.mxu0 %v1259_v2  ;;  %601 = vmatprep.mubr.f32.mxu1 %v1259_v2  ;;  %v774_v37 = vsel %vm371_vm5, %v299_v13, %v766_v27 }
 0x10e   : > { %v1181_v23 = vunpack.i.h.bf16 %v1179_v20  ;;  %v1180_v24 = vunpack.i.l.bf16 %v1179_v20  ;;  %v1217_v38 = vpack.i.bf16 %v774_v37, %v772_v36  ;;  %v1202_v41 = vpack.i.bf16 %v770_v39, %v775_v40  ;;  %v345_v36 = vld [vmem:[%s1525_s1 + $0x4] sm:$0x3] }
 0x10f   : > { %520 = vrot.lane.b32.xlu0 %v505_v15, %s1255_s26  ;;  %1208 = vrot.lane.b32.xlu1 %v1207_v21, %s1256_s27  ;;  %v357_v28 = vsel %vm355_vm10, %v1175_v19, %v1176_v18  ;;  %v773_v0 = vsel %vm371_vm5, %v1375_v5, %v1170_v12  ;;  %v302_v8 = vsel %vm1433_vm14, 0.0, %v1375_v5 }
 0x110   : > { %v368_v30 = vsel %vm366_vm11, %v1180_v24, %v1181_v23  ;;  %v373_v31 = vsel %vm371_vm5, %v271_v17, %v357_v28  ;;  %v1184_v43 = vpop.permute.xlu0 %1183 }
 0x111   : > { %v1412_v34 = vsel %vm371_vm5, %v303_v29, %v368_v30  ;;  %v318_v42 = vpop.permute.xlu1 %317  ;;  %v1186_v44 = vunpack.i.h.bf16 %v1184_v43  ;;  %v1185_v45 = vunpack.i.l.bf16 %v1184_v43 }
 0x112   : > { %v1080_v35 = vpack.c.bf16 %v1412_v34, %v373_v31 }
 0x113   : > { %1198 = vrot.lane.b32.xlu0 %v1197_v32, %s1255_s26  ;;  %1213 = vrot.lane.b32.xlu1 %v1212_v33, %s1255_s26  ;;  %v325_v50 = vsel %vm323_vm12, %v1185_v45, %v1186_v44  ;;  %v324_v60 = vsel %vm323_vm12, %v318_v42, %v1185_v45 }
 0x114   : > { %1081 = vmatprep.subr.bf16.mxu0 %v1080_v35  ;;  %v329_v56 = vsel %vm1368_vm9, 0.0, %v325_v50  ;;  %v328_v14 = vsel %vm1433_vm14, 0.0, %v324_v60 }
 0x115   : > { %v1189_v46 = vpop.permute.xlu1 %1188 }
 0x116   : > { %v1191_v48 = vunpack.i.h.bf16 %v1189_v46  ;;  %v1190_v49 = vunpack.i.l.bf16 %v1189_v46 }
 0x117   : > { %635 = vrot.lane.b32.xlu0 %v347_v4, %s1258_s29  ;;  %1218 = vrot.lane.b32.xlu1 %v1217_v38, %s1256_s27 }
 0x118   : > { %v643_v55 = vsel %vm641_vm13, %v1190_v49, %v1191_v48 }
 0x119   : > { %v647_v7 = vsel %vm371_vm5, %v329_v56, %v643_v55 }
 0x11a   : > { %v1088_v23 = vpack.c.bf16 %v647_v7, %v1412_v34  ;;  %v344_v34 = vld [vmem:[%s1525_s1 + $0x2] sm:$0x3] }
 0x11b   : > { %1203 = vrot.lane.b32.xlu0 %v1202_v41, %s1256_s27  ;;  %788 = vrot.lane.b32.xlu1 %v773_v0, %s1256_s27  ;;  %v346_v41 = vld [vmem:[%s1525_s1 + $0x6] sm:$0x3] }
 0x17d   : > { %v1194_v47 = vpop.permute.xlu0 %1193 }
 0x17e   : > { %v1196_v57 = vunpack.i.h.bf16 %v1194_v47  ;;  %v1195_v58 = vunpack.i.l.bf16 %v1194_v47 }
 0x181   : > { %v521_v51 = vpop.permute.xlu0 %520  ;;  %v1209_v52 = vpop.permute.xlu1 %1208 }
 0x182   : > { %v1210_v53 = vunpack.i.l.bf16 %v1209_v52  ;;  %v1211_v27 = vunpack.i.h.bf16 %v1209_v52 }
 0x184   : > { %v367_v63 = vsel %vm366_vm11, %v1210_v53, %v1180_v24 }
 0x185   : > { %v1199_v59 = vpop.permute.xlu0 %1198  ;;  %v1214_v61 = vpop.permute.xlu1 %1213  ;;  %v374_v5 = vsel %vm371_vm5, %v302_v8, %v367_v63 }
 0x186   : > { %v1201_v6 = vunpack.i.h.bf16 %v1199_v59  ;;  %v1200_v11 = vunpack.i.l.bf16 %v1199_v59  ;;  %v1216_v3 = vunpack.i.h.bf16 %v1214_v61  ;;  %v1215_v4 = vunpack.i.l.bf16 %v1214_v61 }
 0x188   : > { %v356_v9 = vsel %vm355_vm10, %v1200_v11, %v1175_v19  ;;  %v527_v1 = vsel %vm355_vm10, %v1201_v6, %v1215_v4  ;;  %v529_v10 = vsel %vm355_vm10, %v1216_v3, %v1195_v58  ;;  %v526_v12 = vsel %vm355_vm10, %v1196_v57, %v1201_v6 }
 0x189   : > { %v636_v13 = vpop.permute.xlu0 %635  ;;  %v1219_v15 = vpop.permute.xlu1 %1218  ;;  %v372_v16 = vsel %vm371_vm5, %v270_v62, %v356_v9  ;;  %v1084_v17 = vpack.c.bf16 %v529_v10, %v527_v1  ;;  %v528_v18 = vsel %vm355_vm10, %v521_v51, %v1216_v3 }
 0x18a   : > { %v642_v19 = vsel %vm641_vm13, %v636_v13, %v1190_v49  ;;  %v1082_v20 = vpack.c.bf16 %v374_v5, %v372_v16  ;;  %v1086_v22 = vpack.c.bf16 %v528_v18, %v526_v12  ;;  %v1221_v24 = vunpack.i.h.bf16 %v1219_v15 }
 0x18b   : > { %v646_v21 = vsel %vm371_vm5, %v328_v14, %v642_v19  ;;  %1085 = vmatprep.subr.bf16.mxu1 %v1084_v17  ;;  %v1220_v25 = vunpack.i.l.bf16 %v1219_v15 }
 0x18c   : > { %1083 = vmatpush1.bf16.msra.mxu0 %v1082_v20  ;;  %1087 = vmatpush1.bf16.msra.mxu1 %v1086_v22  ;;  %v1090_v30 = vpack.c.bf16 %v646_v21, %v374_v5 }
 0x18d   : > { %v1204_v28 = vpop.permute.xlu0 %1203  ;;  %1089 = vmatprep.subr.bf16.mxu0 %v1088_v23  ;;  %v789_v29 = vpop.permute.xlu1 %788  ;;  %v795_v37 = vsel %vm366_vm11, %v1211_v27, %v1220_v25 }
 0x18e   : > { %v1206_v31 = vunpack.i.h.bf16 %v1204_v28  ;;  %v1205_v32 = vunpack.i.l.bf16 %v1204_v28  ;;  %v796_v33 = vsel %vm366_vm11, %v789_v29, %v1221_v24 }
 0x18f   : > { %1064 = vmatmul.mubr.msk.f32.vlgmr.msra.gmra.mrb[0].mxu0 %vm376_vm15, %v343_v26  ;;  %1066 = vmatmul.mubr.msk.f32.vlgmr.msra.gmra.mrb[0].mxu1 %vm376_vm15, %v344_v34 }
 0x190   : > { %v794_v35 = vsel %vm366_vm11, %v1206_v31, %v1211_v27  ;;  %1091 = vmatpush1.bf16.msra.mxu0 %v1090_v30  ;;  %715 = vmatprep.mubr.f32.mxu0 %v1259_v2  ;;  %v797_v38 = vsel %vm366_vm11, %v1221_v24, %v1205_v32 }
 0x191   : > { %v1094_v39 = vpack.c.bf16 %v796_v33, %v794_v35  ;;  %v1092_v40 = vpack.c.bf16 %v797_v38, %v795_v37  ;;  %869 = vmatprep.mubr.f32.mxu1 %v1259_v2 }
 0x193   : > { %1068 = vmatmul.mubr.msk.f32.vlgmr.msra.gmra.mrb[2].mxu0 %vm376_vm15, %v345_v36  ;;  %1093 = vmatprep.subr.bf16.mxu1 %v1092_v40 }
 0x194   : > { %1095 = vmatpush1.bf16.msra.mxu1 %v1094_v39 }
 0x197   : > { %1070 = vmatmul.mubr.msk.f32.vlgmr.msra.gmra.mrb[2].mxu1 %vm376_vm15, %v346_v41 }
 0x262   : > { %v446_v0 = vpop.f32.mrb[0].mxu0  ;;  %v603_v47 = vpop.f32.mrb[0].mxu1 }
 0x263   : > { %v469_v42 = vmul.f32 %v446_v0, %v446_v0  ;;  %v448_v2 = vpop.f32.mrb[1].mxu0  ;;  %v464_v43 = vsel %vm463_vm0, %v446_v0, 0.0  ;;  %v626_v50 = vmul.f32 %v603_v47, %v603_v47  ;;  %v605_v51 = vpop.f32.mrb[1].mxu1  ;;  %v621_v52 = vsel %vm463_vm0, %v603_v47, 0.0 }
 0x264   : > { %v453_v44 = vcombine.low %v446_v0, %v448_v2  ;;  %v470_v45 = vmul.f32 %v448_v2, %v448_v2  ;;  %v465_v46 = vsel %vm463_vm0, %v448_v2, 0.0  ;;  %v610_v55 = vcombine.low %v603_v47, %v605_v51 }
 0x265   : > { %v466_v48 = vadd.f32 %v465_v46, %v464_v43  ;;  %v471_v49 = vsel %vm463_vm0, %v469_v42, 0.0  ;;  %v627_v56 = vmul.f32 %v605_v51, %v605_v51  ;;  %v622_v57 = vsel %vm463_vm0, %v605_v51, 0.0 }
 0x266   : > { %1065 = vst.sshfl [vmem:[%s1489_s18] sm:$0x33 pattern:$0x76325410] %v453_v44  ;;  %v717_v53 = vpop.f32.mrb[2].mxu0  ;;  %v472_v54 = vsel %vm463_vm0, %v470_v45, 0.0  ;;  %v623_v63 = vadd.f32 %v622_v57, %v621_v52  ;;  %v628_v4 = vsel %vm463_vm0, %v626_v50, 0.0 }
 0x267   : > { %v740_v58 = vmul.f32 %v717_v53, %v717_v53  ;;  %v719_v59 = vpop.f32.mrb[3].mxu0  ;;  %467 = vadd.xlane.f32.xlu0 %v466_v48  ;;  %v473_v61 = vadd.f32 %v472_v54, %v471_v49  ;;  %v735_v62 = vsel %vm463_vm0, %v717_v53, 0.0  ;;  %1077 = vst.sshfl [vmem:[%s1489_s18 + $0x4] sm:$0x33 pattern:$0x76325410] %v610_v55 }
 0x268   : > { %v724_v6 = vcombine.low %v717_v53, %v719_v59  ;;  %v736_v11 = vsel %vm463_vm0, %v719_v59, 0.0  ;;  %v741_v3 = vmul.f32 %v719_v59, %v719_v59  ;;  %v629_v7 = vsel %vm463_vm0, %v627_v56, 0.0 }
 0x269   : > { %474 = vadd.xlane.f32.xlu1 %v473_v61  ;;  %v737_v8 = vadd.f32 %v736_v11, %v735_v62  ;;  %v742_v60 = vsel %vm463_vm0, %v740_v58, 0.0  ;;  %v630_v10 = vadd.f32 %v629_v7, %v628_v4 }
 0x26a   : > { %1078 = vst.sshfl [vmem:[%s1489_s18 + $0x8] sm:$0x33 pattern:$0x76325410] %v724_v6  ;;  %v743_v9 = vsel %vm463_vm0, %v741_v3, 0.0  ;;  %v871_v1 = vpop.f32.mrb[2].mxu1 }
 0x26b   : > { %v744_v12 = vadd.f32 %v743_v9, %v742_v60  ;;  %v894_v13 = vmul.f32 %v871_v1, %v871_v1  ;;  %v873_v15 = vpop.f32.mrb[3].mxu1  ;;  %v889_v16 = vsel %vm463_vm0, %v871_v1, 0.0 }
 0x26c   : > { %v878_v5 = vcombine.low %v871_v1, %v873_v15  ;;  %v890_v17 = vsel %vm463_vm0, %v873_v15, 0.0  ;;  %v895_v18 = vmul.f32 %v873_v15, %v873_v15 }
 0x26d   : > { %738 = vadd.xlane.f32.xlu1 %v737_v8  ;;  %745 = vadd.xlane.f32.xlu0 %v744_v12  ;;  %v891_v14 = vadd.f32 %v890_v17, %v889_v16  ;;  %v896_v19 = vsel %vm463_vm0, %v894_v13, 0.0 }
 0x26e   : > { %1079 = vst.sshfl [vmem:[%s1489_s18 + $0xc] sm:$0x33 pattern:$0x76325410] %v878_v5  ;;  %v897_v20 = vsel %vm463_vm0, %v895_v18, 0.0 }
 0x26f   : > { %v898_v21 = vadd.f32 %v897_v20, %v896_v19 }
 0x271   : > { %624 = vadd.xlane.f32.xlu0 %v623_v63  ;;  %892 = vadd.xlane.f32.xlu1 %v891_v14 }
 0x275   : > { %631 = vadd.xlane.f32.xlu0 %v630_v10 }
 0x279   : > { %899 = vadd.xlane.f32.xlu0 %v898_v21 }
 0x2f4   : > { %v468_v22 = vpop.xlane.xlu0 %467 }
 0x2f6   : > { %v475_v23 = vpop.xlane.xlu1 %474 }
 0x2fa   : > { %v746_v24 = vpop.xlane.xlu0 %745  ;;  %v739_v25 = vpop.xlane.xlu1 %738 }
 0x2fe   : > { %v625_v26 = vpop.xlane.xlu0 %624  ;;  %v893_v28 = vpop.xlane.xlu1 %892 }
 0x2ff   : > { %v633_v27 = vadd.f32 %v625_v26, %v468_v22 }
 0x301   : > { %v747_v29 = vadd.f32 %v739_v25, %v633_v27 }
 0x302   : > { %v632_v30 = vpop.xlane.xlu0 %631 }
 0x303   : > { %v901_v31 = vadd.f32 %v893_v28, %v747_v29  ;;  %v634_v32 = vadd.f32 %v632_v30, %v475_v23 }
 0x305   : > { %904 = vst.msk [vmem:[%s230_s22] sm:$0x3] %vm903_vm1, %v901_v31  ;;  %v748_v33 = vadd.f32 %v746_v24, %v634_v32 }
 0x306   : > { %v900_v34 = vpop.xlane.xlu0 %899 }
 0x307   : > { %v902_v35 = vadd.f32 %v900_v34, %v748_v33 }
 0x309   : > { %1072 = vst.msk [vmem:[%s230_s22 + $0x2] sm:$0x3] %vm903_vm1, %v902_v35 }
 0x30a PF: > { %s14_s14 = sadd.s32 1, %s1247_s14   ;;  %s1536_s12 = smov %s1243_s13 }
 0x30b   : > { %p11_p5 = scmp.ge.s32.totalorder %s14_s14, 4   ;;  %s1537_s13 = smov %s1539_s15 }
 0x30d   :  { %13 = sbr.rel (!%p11_p5) target bundleno = 2 (0x2), region = 77 }

</bundles_post_ra>
